<compile_context>
chip_gen: v6e
topology: v6e:2x2x1
jax: 0.10.0
libtpu: 0.0.40
codegen_flags: <defaults>
</compile_context>

<pallas_src>
import math

import jax
import jax.numpy as jnp
from jax.experimental import pallas as pl
from jax.experimental.pallas import tpu as pltpu


def attention_q_kernel(
    demo_ref,   # (TBt, L*D) bf16  demonstration block, (L, D) flattened onto lanes
    len_ref,    # (TBt, 1)   int32 demonstration lengths
    obs_ref,    # (TBt, D)   bf16  current observation ("state")
    act_ref,    # (TBt, A)   bf16  action
    wqk_ref,    # (D, D)     bf16  (Wq @ Wk^T) / sqrt(H)   fused, pre-scaled
    bqk_ref,    # (1, D)     f32   (bq @ Wk^T) / sqrt(H)
    sel_ref,    # (L*D, L)   f32   block 0/1 selector: per-demo-step lane reduce
    selt_ref,   # (L, L*D)   f32   transpose of sel: p -> lane expansion
    w1_ref,     # (L*D+A+D, 2H) bf16 fused q_head layer-1 weight [stack(Wv@w1c); w1a; w1o]
    b1_ref,     # (1, 2H)    f32
    w2_ref,     # (2H, 1)    bf16
    b2_ref,     # (1, 1)     f32
    out_ref,    # (TBt, 1)   f32
):
    L = sel_ref.shape[1]

    demo_b = demo_ref[...]                              # (TBt, L*D) bf16
    demo_f = demo_b.astype(jnp.float32)                 # reused twice; lane-dense
    obs_b = obs_ref[...]                                # (TBt, D)   bf16
    act_b = act_ref[...]                                # (TBt, A)   bf16
    lens = len_ref[...]                                 # (TBt, 1)   int32

    # Query projected into key space (scale already folded into the weight): 1 MXU push.
    qk = jnp.dot(obs_b, wqk_ref[...],
                 preferred_element_type=jnp.float32) + bqk_ref[...]        # (TBt, D) f32

    # Scores: lane-dense VPU product over the full L*D row, then the per-demo-step
    # reduction as a (L*D -> L) 0/1 matmul on the MXU (no XLU axis reduce).
    qk_tiled = jnp.concatenate([qk] * L, axis=-1)                          # (TBt, L*D)
    prod = qk_tiled * demo_f                                               # (TBt, L*D)
    s = jnp.dot(prod, sel_ref[...], preferred_element_type=jnp.float32)    # (TBt, L)

    # Mask steps beyond the demonstration length. Finite sentinel so rows with
    # length == 0 give a uniform softmax instead of NaN (matches the dense reference).
    pos = jax.lax.broadcasted_iota(jnp.int32, s.shape, 1)                  # (TBt, L)
    s = jnp.where(pos < lens, s, -1e30)

    # 2D masked softmax over L, all in f32 (no bf16 VPU/EUP on v5e).
    m = jnp.max(s, axis=-1, keepdims=True)                                 # (TBt, 1)
    e = jnp.exp(s - m)                                                     # (TBt, L)
    denom = jnp.sum(e, axis=-1, keepdims=True)                             # (TBt, 1)
    p = e * pl.reciprocal(denom, approx=True)                              # (TBt, L)

    # Expand p back onto the L*D lanes (0/1 matmul) and weight the demonstration.
    p_expand = jnp.dot(p, selt_ref[...],
                       preferred_element_type=jnp.float32)                 # (TBt, L*D)
    wdemo = (p_expand * demo_f).astype(jnp.bfloat16)                       # (TBt, L*D)

    # Fused q_head layer 1: Wv already folded into the stacked weight, so the
    # attention-weighted demonstration feeds the matmul directly. One MXU push.
    x = jnp.concatenate([wdemo, act_b, obs_b], axis=-1)                    # (TBt, L*D+A+D)
    h = jnp.dot(x, w1_ref[...], preferred_element_type=jnp.float32) + b1_ref[...]
    h = jnp.maximum(h, 0.0)                                                # (TBt, 2H)

    out_ref[...] = (jnp.dot(h.astype(jnp.bfloat16), w2_ref[...],
                            preferred_element_type=jnp.float32) + b2_ref[...])


def init_params(key, state_dim, action_size, lstm_size=32):
    H = lstm_size
    ks = jax.random.split(key, 7)

    def lin(k, fan_in, fan_out):
        return (jax.random.normal(k, (fan_in, fan_out), jnp.float32)
                * (1.0 / math.sqrt(fan_in)))

    return dict(
        wq=lin(ks[0], state_dim, H), bq=jnp.zeros((1, H), jnp.float32),
        wk=lin(ks[1], state_dim, H),
        wv=lin(ks[2], state_dim, H),
        w1c=lin(ks[3], H, 2 * H),
        w1a=lin(ks[4], action_size, 2 * H),
        w1o=lin(ks[5], state_dim, 2 * H),
        b1=jnp.zeros((1, 2 * H), jnp.float32),
        w2=lin(ks[6], 2 * H, 1),
        b2=jnp.zeros((1, 1), jnp.float32),
    )


def _round_up(x, m):
    return ((x + m - 1) // m) * m


def _pick_tb_tile(tb, want=1024):
    """Row tile: multiple of 8, capped so the grid has >=2 steps when rows allow it
    (keeps both v7x TensorCores busy); inputs are padded to a multiple of the tile."""
    tb8 = _round_up(tb, 8)
    half = _round_up((tb8 + 1) // 2, 8)
    return max(8, min(want, half))


def q_attention_forward(params, demonstration, demo_lengths_tb, current_obs, action,
                        rnn_state, tb_tile=1024):
    """Mirrors QAttentionModel.forward for inputs with explicit (T, B, ...) leading dims."""
    T, B, L, D = demonstration.shape
    TB = T * B
    A = action.shape[-1]
    H = params["wq"].shape[1]                      # key/query width (lstm_size)

    # demonstration_lengths = observation.demonstration_length.view(T, B)[0]
    # (matches the original module; silently wrong if lengths ever vary over T).
    demo_lengths = demo_lengths_tb.reshape(T, B)[0]                        # (B,)

    # Natural row-major flatten only (metadata reshape, no HBM transpose); bf16 halves
    # the DMA bytes of the dominant input.
    demo = demonstration.reshape(TB, L * D).astype(jnp.bfloat16)           # (TB, L*D)
    obs = current_obs.reshape(TB, D).astype(jnp.bfloat16)
    act = action.reshape(TB, A).astype(jnp.bfloat16)
    lens = jnp.broadcast_to(demo_lengths[None, :], (T, B)).reshape(TB, 1).astype(jnp.int32)

    # Weight preprocessing (tiny, trace-time):
    #   * fold Wq·Wk^T and the 1/sqrt(H) attention scale into one (D, D) weight,
    #   * fold Wv into the q_head (w1c' = Wv @ w1c) and stack it L times so the
    #     lane-flattened weighted demonstration feeds the fused layer-1 matmul directly,
    #   * build the 0/1 selector matrices for the per-step reduce / expand.
    inv_sqrt_h = 1.0 / math.sqrt(H)
    wqk = ((params["wq"] @ params["wk"].T) * inv_sqrt_h).astype(jnp.bfloat16)   # (D, D)
    bqk = ((params["bq"] @ params["wk"].T) * inv_sqrt_h).astype(jnp.float32)    # (1, D)
    wc = params["wv"] @ params["w1c"]                                           # (D, 2H)
    w1 = jnp.concatenate([jnp.tile(wc, (L, 1)), params["w1a"], params["w1o"]],
                         axis=0).astype(jnp.bfloat16)                           # (L*D+A+D, 2H)
    b1 = params["b1"].astype(jnp.float32)
    w2 = params["w2"].astype(jnp.bfloat16)
    b2 = params["b2"].astype(jnp.float32)
    sel = jnp.repeat(jnp.eye(L, dtype=jnp.float32), D, axis=0)                  # (L*D, L)
    selt = jnp.repeat(jnp.eye(L, dtype=jnp.float32), D, axis=1)                 # (L, L*D)

    # Tile + pad so awkward TB never silently falls back to a whole-array-resident tile.
    tbt = _pick_tb_tile(TB, tb_tile)
    TB_pad = _round_up(TB, tbt)
    if TB_pad != TB:
        pad = TB_pad - TB
        demo = jnp.pad(demo, ((0, pad), (0, 0)))
        obs = jnp.pad(obs, ((0, pad), (0, 0)))
        act = jnp.pad(act, ((0, pad), (0, 0)))
        lens = jnp.pad(lens, ((0, pad), (0, 0)))    # len 0 -> fully masked, finite output
    grid = (TB_pad // tbt,)

    def full2d(w):
        return pl.BlockSpec(w.shape, lambda i: (0, 0))

    out = pl.pallas_call(
        attention_q_kernel,
        out_shape=jax.ShapeDtypeStruct((TB_pad, 1), jnp.float32),
        grid=grid,
        in_specs=[
            pl.BlockSpec((tbt, L * D), lambda i: (i, 0)),   # demo (flattened, lane-dense)
            pl.BlockSpec((tbt, 1), lambda i: (i, 0)),       # lens
            pl.BlockSpec((tbt, D), lambda i: (i, 0)),       # obs
            pl.BlockSpec((tbt, A), lambda i: (i, 0)),       # act
            full2d(wqk), full2d(bqk), full2d(sel), full2d(selt),
            full2d(w1), full2d(b1), full2d(w2), full2d(b2),
        ],
        out_specs=pl.BlockSpec((tbt, 1), lambda i: (i, 0)),
        compiler_params=pltpu.CompilerParams(
            dimension_semantics=("parallel",),
            # Per-step footprint at tbt=1024 is ~3 MiB (bf16 inputs double-buffered +
            # f32 temps) — well under every generation's scoped VMEM; set explicitly.
            vmem_limit_bytes=32 * 1024 * 1024),
    )(demo, lens, obs, act, wqk, bqk, sel, selt, w1, b1, w2, b2)

    q = out[:TB, 0].reshape(T, B)     # restore_leading_dims -> (T, B)
    return q, rnn_state               # rnn_state passed through


def reference_forward(params, demonstration, demo_lengths_tb, current_obs, action):
    """Pure-JAX reference of the same math (standard K/V formulation), for validation."""
    T, B, L, D = demonstration.shape
    TB = T * B
    demo_lengths = demo_lengths_tb.reshape(T, B)[0]
    demo = demonstration.reshape(TB, L, D)
    obs = current_obs.reshape(TB, D)
    act = action.reshape(TB, -1)
    lens = jnp.broadcast_to(demo_lengths[None, :], (T, B)).reshape(TB, 1)

    H = params["wq"].shape[1]
    q = obs @ params["wq"] + params["bq"]
    keys = jnp.einsum("tld,dh->tlh", demo, params["wk"])
    vals = jnp.einsum("tld,dh->tlh", demo, params["wv"])
    scores = jnp.einsum("th,tlh->tl", q, keys) / jnp.sqrt(jnp.float32(H))
    mask = jnp.arange(L)[None, :] < lens
    scores = jnp.where(mask, scores, -1e30)
    attn = jax.nn.softmax(scores, axis=-1)
    ctx = jnp.einsum("tl,tlh->th", attn, vals)
    h = jnp.maximum(ctx @ params["w1c"] + act @ params["w1a"] + obs @ params["w1o"]
                    + params["b1"], 0.0)
    out = h @ params["w2"] + params["b2"]
    return out.reshape(T, B)


if __name__ == "__main__":
    T, B = 2, 4                 # leading dims
    L = 8                       # max_demonstration_length
    D = 16                      # observation_shape.state[0]
    A = 4                       # action_size
    H = 32                      # lstm_size

    key = jax.random.PRNGKey(0)
    k1, k2, k3, k4, kp = jax.random.split(key, 5)

    demonstration = jax.random.normal(k1, (T, B, L, D), jnp.float32)
    state = jax.random.normal(k2, (T, B, D), jnp.float32)
    action = jax.random.normal(k3, (T, B, A), jnp.float32)
    demo_lengths_tb = jnp.broadcast_to(
        jax.random.randint(k4, (B,), 1, L + 1)[None, :], (T, B)).astype(jnp.int32)
    rnn_state = jnp.zeros((2, B, H), jnp.float32)   # placeholder, passed through

    params = init_params(kp, D, A, H)

    # Quantize activations to bf16 once so the f32 reference sees what the kernel sees;
    # remaining difference = bf16 rounding of the fused/composed weights and of the
    # bf16 MXU operands, plus the EUP-approx softmax reciprocal -> 2e-2 tolerance.
    demo_q = demonstration.astype(jnp.bfloat16).astype(jnp.float32)
    state_q = state.astype(jnp.bfloat16).astype(jnp.float32)
    action_q = action.astype(jnp.bfloat16).astype(jnp.float32)

    q, new_state = q_attention_forward(params, demo_q, demo_lengths_tb,
                                       state_q, action_q, rnn_state)
    jax.block_until_ready(q)

    q_ref = reference_forward(params, demo_q, demo_lengths_tb, state_q, action_q)
    assert q.shape == (T, B)
    assert jnp.allclose(q, q_ref, rtol=2e-2, atol=2e-2), (q, q_ref)

    print("KERNEL_OK")
</pallas_src>

<mosaic_0001>
module attributes {stable_mosaic.version = 11 : i64} {
  func.func @attention_q_kernel(%arg0: i32, %arg1: memref<8x128xbf16, #tpu.memory_space<vmem>>, %arg2: memref<8x1xi32, #tpu.memory_space<vmem>>, %arg3: memref<8x16xbf16, #tpu.memory_space<vmem>>, %arg4: memref<8x4xbf16, #tpu.memory_space<vmem>>, %arg5: memref<16x16xbf16, #tpu.memory_space<vmem>>, %arg6: memref<1x16xf32, #tpu.memory_space<vmem>>, %arg7: memref<128x8xf32, #tpu.memory_space<vmem>>, %arg8: memref<8x128xf32, #tpu.memory_space<vmem>>, %arg9: memref<148x64xbf16, #tpu.memory_space<vmem>>, %arg10: memref<1x64xf32, #tpu.memory_space<vmem>>, %arg11: memref<64x1xbf16, #tpu.memory_space<vmem>>, %arg12: memref<1x1xf32, #tpu.memory_space<vmem>>, %arg13: memref<8x1xf32, #tpu.memory_space<vmem>>) attributes {dimension_semantics = [#tpu.dimension_semantics<parallel>], iteration_bounds = array<i64: 1>, scalar_prefetch = 0 : i64, scratch_operands = 0 : i64, tpu.core_type = #tpu.core_type<tc>, window_params = [{transform_indices = @transform_0, window_bounds = array<i64: 8, 128>}, {transform_indices = @transform_1, window_bounds = array<i64: 8, 1>}, {transform_indices = @transform_2, window_bounds = array<i64: 8, 16>}, {transform_indices = @transform_3, window_bounds = array<i64: 8, 4>}, {pipeline_mode = #tpu.pipeline_mode<synchronous>, transform_indices = @transform_4, window_bounds = array<i64: 16, 16>}, {pipeline_mode = #tpu.pipeline_mode<synchronous>, transform_indices = @transform_5, window_bounds = array<i64: 1, 16>}, {pipeline_mode = #tpu.pipeline_mode<synchronous>, transform_indices = @transform_6, window_bounds = array<i64: 128, 8>}, {pipeline_mode = #tpu.pipeline_mode<synchronous>, transform_indices = @transform_7, window_bounds = array<i64: 8, 128>}, {pipeline_mode = #tpu.pipeline_mode<synchronous>, transform_indices = @transform_8, window_bounds = array<i64: 148, 64>}, {pipeline_mode = #tpu.pipeline_mode<synchronous>, transform_indices = @transform_9, window_bounds = array<i64: 1, 64>}, {pipeline_mode = #tpu.pipeline_mode<synchronous>, transform_indices = @transform_10, window_bounds = array<i64: 64, 1>}, {pipeline_mode = #tpu.pipeline_mode<synchronous>, transform_indices = @transform_11, window_bounds = array<i64: 1, 1>}, {transform_indices = @transform_12, window_bounds = array<i64: 8, 1>}]} {
    %c0 = arith.constant 0 : index
    %c0_0 = arith.constant 0 : index
    %0 = vector.load %arg1[%c0, %c0_0] : memref<8x128xbf16, #tpu.memory_space<vmem>>, vector<8x128xbf16>
    %1 = arith.extf %0 : vector<8x128xbf16> to vector<8x128xf32>
    %c0_1 = arith.constant 0 : index
    %c0_2 = arith.constant 0 : index
    %2 = vector.load %arg3[%c0_1, %c0_2] : memref<8x16xbf16, #tpu.memory_space<vmem>>, vector<8x16xbf16>
    %c0_3 = arith.constant 0 : index
    %c0_4 = arith.constant 0 : index
    %3 = vector.load %arg4[%c0_3, %c0_4] : memref<8x4xbf16, #tpu.memory_space<vmem>>, vector<8x4xbf16>
    %c0_5 = arith.constant 0 : index
    %c0_6 = arith.constant 0 : index
    %4 = vector.load %arg2[%c0_5, %c0_6] : memref<8x1xi32, #tpu.memory_space<vmem>>, vector<8x1xi32>
    %c0_7 = arith.constant 0 : index
    %c0_8 = arith.constant 0 : index
    %5 = vector.load %arg5[%c0_7, %c0_8] : memref<16x16xbf16, #tpu.memory_space<vmem>>, vector<16x16xbf16>
    %cst = arith.constant dense<0.000000e+00> : vector<8x16xf32>
    %6 = tpu.matmul %2, %5, %cst {dimension_numbers = #tpu.dot_dimension_numbers<[1], [0], [0], [1], [0, 0, 1, 1], [], []>} : vector<8x16xbf16>, vector<16x16xbf16>, vector<8x16xf32> -> vector<8x16xf32>
    %c0_9 = arith.constant 0 : index
    %c0_10 = arith.constant 0 : index
    %7 = vector.load %arg6[%c0_9, %c0_10] : memref<1x16xf32, #tpu.memory_space<vmem>>, vector<1x16xf32>
    %8 = vector.broadcast %7 : vector<1x16xf32> to vector<8x16xf32>
    %9 = arith.addf %6, %8 : vector<8x16xf32>
    %10 = tpu.concatenate %9, %9, %9, %9, %9, %9, %9, %9 in 1 : vector<8x16xf32>, vector<8x16xf32>, vector<8x16xf32>, vector<8x16xf32>, vector<8x16xf32>, vector<8x16xf32>, vector<8x16xf32>, vector<8x16xf32> -> vector<8x128xf32>
    %11 = arith.mulf %10, %1 : vector<8x128xf32>
    %c0_11 = arith.constant 0 : index
    %c0_12 = arith.constant 0 : index
    %12 = vector.load %arg7[%c0_11, %c0_12] : memref<128x8xf32, #tpu.memory_space<vmem>>, vector<128x8xf32>
    %cst_13 = arith.constant dense<0.000000e+00> : vector<8x8xf32>
    %13 = tpu.matmul %11, %12, %cst_13 {dimension_numbers = #tpu.dot_dimension_numbers<[1], [0], [0], [1], [0, 0, 1, 1], [], []>} : vector<8x128xf32>, vector<128x8xf32>, vector<8x8xf32> -> vector<8x8xf32>
    %14 = tpu.iota {dimensions = array<i32: 1>} : vector<8x8xi32>
    %15 = vector.broadcast %4 : vector<8x1xi32> to vector<8x8xi32>
    %16 = arith.cmpi slt, %14, %15 : vector<8x8xi32>
    %cst_14 = arith.constant -1.000000e+30 : f32
    %17 = vector.broadcast %cst_14 : f32 to vector<8x8xf32>
    %18 = arith.select %16, %13, %17 : vector<8x8xi1>, vector<8x8xf32>
    %cst_15 = arith.constant dense<0xFF800000> : vector<8xf32>
    %19 = vector.multi_reduction <maximumf>, %18, %cst_15 [1] : vector<8x8xf32> to vector<8xf32>
    %20 = vector.shape_cast %19 : vector<8xf32> to vector<8x1xf32>
    %21 = vector.broadcast %20 : vector<8x1xf32> to vector<8x8xf32>
    %22 = arith.subf %18, %21 : vector<8x8xf32>
    %23 = math.exp %22 : vector<8x8xf32>
    %cst_16 = arith.constant dense<0.000000e+00> : vector<8xf32>
    %24 = vector.multi_reduction <add>, %23, %cst_16 [1] : vector<8x8xf32> to vector<8xf32>
    %25 = vector.shape_cast %24 : vector<8xf32> to vector<8x1xf32>
    %26 = tpu.reciprocal %25 {approx = true} : vector<8x1xf32> -> vector<8x1xf32>
    %27 = vector.broadcast %26 : vector<8x1xf32> to vector<8x8xf32>
    %28 = arith.mulf %23, %27 : vector<8x8xf32>
    %c0_17 = arith.constant 0 : index
    %c0_18 = arith.constant 0 : index
    %29 = vector.load %arg8[%c0_17, %c0_18] : memref<8x128xf32, #tpu.memory_space<vmem>>, vector<8x128xf32>
    %cst_19 = arith.constant dense<0.000000e+00> : vector<8x128xf32>
    %30 = tpu.matmul %28, %29, %cst_19 {dimension_numbers = #tpu.dot_dimension_numbers<[1], [0], [0], [1], [0, 0, 1, 1], [], []>} : vector<8x8xf32>, vector<8x128xf32>, vector<8x128xf32> -> vector<8x128xf32>
    %31 = arith.mulf %30, %1 : vector<8x128xf32>
    %32 = arith.truncf %31 : vector<8x128xf32> to vector<8x128xbf16>
    %33 = tpu.concatenate %32, %3, %2 in 1 : vector<8x128xbf16>, vector<8x4xbf16>, vector<8x16xbf16> -> vector<8x148xbf16>
    %c0_20 = arith.constant 0 : index
    %c0_21 = arith.constant 0 : index
    %34 = vector.load %arg9[%c0_20, %c0_21] : memref<148x64xbf16, #tpu.memory_space<vmem>>, vector<148x64xbf16>
    %cst_22 = arith.constant dense<0.000000e+00> : vector<8x64xf32>
    %35 = tpu.matmul %33, %34, %cst_22 {dimension_numbers = #tpu.dot_dimension_numbers<[1], [0], [0], [1], [0, 0, 1, 1], [], []>} : vector<8x148xbf16>, vector<148x64xbf16>, vector<8x64xf32> -> vector<8x64xf32>
    %c0_23 = arith.constant 0 : index
    %c0_24 = arith.constant 0 : index
    %36 = vector.load %arg10[%c0_23, %c0_24] : memref<1x64xf32, #tpu.memory_space<vmem>>, vector<1x64xf32>
    %37 = vector.broadcast %36 : vector<1x64xf32> to vector<8x64xf32>
    %38 = arith.addf %35, %37 : vector<8x64xf32>
    %cst_25 = arith.constant 0.000000e+00 : f32
    %39 = vector.broadcast %cst_25 : f32 to vector<8x64xf32>
    %40 = arith.maximumf %38, %39 : vector<8x64xf32>
    %41 = arith.truncf %40 : vector<8x64xf32> to vector<8x64xbf16>
    %c0_26 = arith.constant 0 : index
    %c0_27 = arith.constant 0 : index
    %42 = vector.load %arg11[%c0_26, %c0_27] : memref<64x1xbf16, #tpu.memory_space<vmem>>, vector<64x1xbf16>
    %cst_28 = arith.constant dense<0.000000e+00> : vector<8x1xf32>
    %43 = tpu.matmul %41, %42, %cst_28 {dimension_numbers = #tpu.dot_dimension_numbers<[1], [0], [0], [1], [0, 0, 1, 1], [], []>} : vector<8x64xbf16>, vector<64x1xbf16>, vector<8x1xf32> -> vector<8x1xf32>
    %c0_29 = arith.constant 0 : index
    %c0_30 = arith.constant 0 : index
    %44 = vector.load %arg12[%c0_29, %c0_30] : memref<1x1xf32, #tpu.memory_space<vmem>>, vector<1x1xf32>
    %45 = vector.broadcast %44 : vector<1x1xf32> to vector<8x1xf32>
    %46 = arith.addf %43, %45 : vector<8x1xf32>
    %c0_31 = arith.constant 0 : index
    %c0_32 = arith.constant 0 : index
    %47 = vector.load %arg13[%c0_31, %c0_32] : memref<8x1xf32, #tpu.memory_space<vmem>>, vector<8x1xf32>
    tpu.vector_store %arg13[%c0_31, %c0_32], %46 {strides = array<i32>} : memref<8x1xf32, #tpu.memory_space<vmem>>, vector<8x1xf32>,
    return
  }
  func.func @transform_0(%arg0: i32) -> (i32, i32) {
    %c0_i32 = arith.constant 0 : i32
    %c0_i32_0 = arith.constant 0 : i32
    return %arg0, %c0_i32 : i32, i32
  }
  func.func @transform_1(%arg0: i32) -> (i32, i32) {
    %c0_i32 = arith.constant 0 : i32
    %c0_i32_0 = arith.constant 0 : i32
    return %arg0, %c0_i32 : i32, i32
  }
  func.func @transform_2(%arg0: i32) -> (i32, i32) {
    %c0_i32 = arith.constant 0 : i32
    %c0_i32_0 = arith.constant 0 : i32
    return %arg0, %c0_i32 : i32, i32
  }
  func.func @transform_3(%arg0: i32) -> (i32, i32) {
    %c0_i32 = arith.constant 0 : i32
    %c0_i32_0 = arith.constant 0 : i32
    return %arg0, %c0_i32 : i32, i32
  }
  func.func @transform_4(%arg0: i32) -> (i32, i32) {
    %c0_i32 = arith.constant 0 : i32
    %c0_i32_0 = arith.constant 0 : i32
    %c0_i32_1 = arith.constant 0 : i32
    return %c0_i32, %c0_i32_0 : i32, i32
  }
  func.func @transform_5(%arg0: i32) -> (i32, i32) {
    %c0_i32 = arith.constant 0 : i32
    %c0_i32_0 = arith.constant 0 : i32
    %c0_i32_1 = arith.constant 0 : i32
    return %c0_i32, %c0_i32_0 : i32, i32
  }
  func.func @transform_6(%arg0: i32) -> (i32, i32) {
    %c0_i32 = arith.constant 0 : i32
    %c0_i32_0 = arith.constant 0 : i32
    %c0_i32_1 = arith.constant 0 : i32
    return %c0_i32, %c0_i32_0 : i32, i32
  }
  func.func @transform_7(%arg0: i32) -> (i32, i32) {
    %c0_i32 = arith.constant 0 : i32
    %c0_i32_0 = arith.constant 0 : i32
    %c0_i32_1 = arith.constant 0 : i32
    return %c0_i32, %c0_i32_0 : i32, i32
  }
  func.func @transform_8(%arg0: i32) -> (i32, i32) {
    %c0_i32 = arith.constant 0 : i32
    %c0_i32_0 = arith.constant 0 : i32
    %c0_i32_1 = arith.constant 0 : i32
    return %c0_i32, %c0_i32_0 : i32, i32
  }
  func.func @transform_9(%arg0: i32) -> (i32, i32) {
    %c0_i32 = arith.constant 0 : i32
    %c0_i32_0 = arith.constant 0 : i32
    %c0_i32_1 = arith.constant 0 : i32
    return %c0_i32, %c0_i32_0 : i32, i32
  }
  func.func @transform_10(%arg0: i32) -> (i32, i32) {
    %c0_i32 = arith.constant 0 : i32
    %c0_i32_0 = arith.constant 0 : i32
    %c0_i32_1 = arith.constant 0 : i32
    return %c0_i32, %c0_i32_0 : i32, i32
  }
  func.func @transform_11(%arg0: i32) -> (i32, i32) {
    %c0_i32 = arith.constant 0 : i32
    %c0_i32_0 = arith.constant 0 : i32
    %c0_i32_1 = arith.constant 0 : i32
    return %c0_i32, %c0_i32_0 : i32, i32
  }
  func.func @transform_12(%arg0: i32) -> (i32, i32) {
    %c0_i32 = arith.constant 0 : i32
    %c0_i32_0 = arith.constant 0 : i32
    return %arg0, %c0_i32 : i32, i32
  }
}

</mosaic_0001>

<bundles_post_ra>
// kernel: tpu_custom_call.1
= control target key start
LH: loop header
LB: loop body
LE: loop exit
PB: predicated region body
PF: predicated region fallthrough
CT: control target
= control target key end

     0   :  { %v694_v0 = vmov 0.0   ;;  %vm695_vm0 = vmmov 0   ;;  %vm64_vm1 = vcmask 130048   ;;  %s696_s17 = smov 48   ;;  %v698_v25 = vmov 0   ;;  %s699_s20 = smov 64   ;;  %s951_s4 = inlined_call_operand.vmem [shape: bf16[16,16], index: 4, kind: input, shape index: {}]   ;;  %s952_s2 = inlined_call_operand.vmem [shape: bf16[8,16], index: 2, kind: input, shape index: {}]   ;;  %s953_s6 = inlined_call_operand.vmem [shape: f32[128,8], index: 6, kind: input, shape index: {}]   ;;  %s954_s5 = inlined_call_operand.vmem [shape: f32[1,16], index: 5, kind: input, shape index: {}]   ;;  %s955_s1 = inlined_call_operand.vmem [shape: s32[8,1], index: 1, kind: input, shape index: {}]   ;;  %s956_s0 = inlined_call_operand.vmem [shape: bf16[8,128], index: 0, kind: input, shape index: {}]   ;;  %s957_s7 = inlined_call_operand.vmem [shape: f32[8,128], index: 7, kind: input, shape index: {}]   ;;  %s958_s8 = inlined_call_operand.vmem [shape: bf16[148,64], index: 8, kind: input, shape index: {}]   ;;  %s959_s3 = inlined_call_operand.vmem [shape: bf16[8,4], index: 3, kind: input, shape index: {}]   ;;  %s960_s10 = inlined_call_operand.vmem [shape: bf16[64,1], index: 10, kind: input, shape index: {}]   ;;  %s961_s11 = inlined_call_operand.<no memory space> [shape: f32[1,1], index: 11, kind: input, shape index: {}]   ;;  %s962_s9 = inlined_call_operand.vmem [shape: f32[1,64], index: 9, kind: input, shape index: {}]   ;;  %s963_s12 = inlined_call_operand.vmem [shape: f32[8,1], index: 12, kind: output, shape index: {}]  }
   0x1   :  { %603 = vmatprep.subr.bf16.mxu0 %v694_v0  ;;  %v674_v1 = vld [vmem:[%s951_s4] sm:$0xff]   ;;  %605 = vmatprep.mubr.msk.bf16.mxu0 %vm695_vm0, %v694_v0  ;;  %v159_v3 = vld [vmem:[%s953_s6 + $0x78] sm:$0xff]  ;;  %v158_v4 = vld [vmem:[%s953_s6 + $0x70] sm:$0xff]  ;;  %s700_s21 = smov 32   ;;  %s701_s22 = smov 96   ;;  %vm131_vm2 = vcmask 261120   ;;  %v230_v44 = vlaneseq }
   0x2   :  { %609 = vmatprep.subr.mxu1 %v694_v0  ;;  %641 = vmatprep.mubr.msk.f32.mxu1 %vm695_vm0, %v694_v0  ;;  %v782_v2 = vld [vmem:[%s952_s2] sm:$0xf]  ;;  %v157_v5 = vld [vmem:[%s953_s6 + $0x68] sm:$0xff]  ;;  %v155_v7 = vld [vmem:[%s953_s6 + $0x58] sm:$0xff]  ;;  %s702_s23 = smov 80   ;;  %s703_s4 = smov 112  }
   0x3   :  { %604 = vmatpush3.bf16.msra.mxu0 %v674_v1  ;;  %610 = vmatpush3.msra.mxu1 %v159_v3  ;;  %v156_v6 = vld [vmem:[%s953_s6 + $0x60] sm:$0xff]  ;;  %v154_v8 = vld [vmem:[%s953_s6 + $0x50] sm:$0xff]  ;;  %v153_v9 = vld [vmem:[%s953_s6 + $0x48] sm:$0xff]  ;;  %vm133_vm3 = vcmask 392192   ;;  %vm135_vm4 = vcmask 523264   ;;  %vm137_vm5 = vcmask 654336   ;;  %v558_v57 = vcombine.low %v782_v2, %v782_v2 }
   0x4   :  { %644 = vmatprep.subr.mxu0 %v694_v0  ;;  %611 = vmatprep.subr.mxu1 %v694_v0  ;;  %v152_v10 = vld [vmem:[%s953_s6 + $0x40] sm:$0xff]  ;;  %v151_v11 = vld [vmem:[%s953_s6 + $0x38] sm:$0xff]  ;;  %v150_v12 = vld [vmem:[%s953_s6 + $0x30] sm:$0xff]  ;;  %vm139_vm6 = vcmask 785408   ;;  %vm141_vm7 = vcmask 916480   ;;  %v231_v45 = vand.u32 127, %v230_v44 }
   0x5   :  { %612 = vmatpush3.msra.mxu1 %v158_v4  ;;  %v149_v13 = vld [vmem:[%s953_s6 + $0x28] sm:$0xff]  ;;  %v148_v14 = vld [vmem:[%s953_s6 + $0x20] sm:$0xff]  ;;  %v147_v15 = vld [vmem:[%s953_s6 + $0x18] sm:$0xff]  ;;  %672 = vset.pattern.permute.xlu1 %v698_v25  ;;  %vm237_vm9 = vcmask 64512   ;;  %s704_s27 = smov 4   ;;  %vm420_vm10 = vcmask 1041408  }
   0x6   :  { %606 = vmatmul.mubr.msk.bf16.vlgmr.msra.gmra.mxu0 %vm64_vm1, %v782_v2  ;;  %613 = vmatprep.subr.mxu1 %v694_v0  ;;  %v554_v16 = vld [vmem:[%s954_s5] ss:$0 sm:$0xff]  ;;  %v146_v17 = vld [vmem:[%s953_s6 + $0x10] sm:$0xff]  ;;  %v145_v20 = vld [vmem:[%s953_s6 + $0x8] sm:$0xff]  ;;  %s697_s5 = smov 16   ;;  %vm330_vm11 = vcmask 31744  }
   0x7   :  { %646 = vmatprep.mubr.msk.f32.mxu0 %vm695_vm0, %v694_v0  ;;  %614 = vmatpush3.msra.mxu1 %v157_v5  ;;  %v144_v22 = vld [vmem:[%s953_s6] sm:$0xff]  ;;  %v676_v60 = vld [vmem:[%s958_s8 + $0x38] sm:$0xff]   ;;  %v677_v62 = vld [vmem:[%s958_s8 + $0x30] sm:$0xff]   ;;  %vm417_vm12 = vcmask 162816   ;;  %vm548_vm13 = vcmask 7168  }
   0x8   :  { %615 = vmatprep.subr.mxu1 %v694_v0  ;;  %673 = vset.pattern.permute.xlu0 %v698_v25  ;;  %v48_v26 = vld [vmem:[%s955_s1] sm:$0xff]  ;;  %v678_v63 = vld [vmem:[%s958_s8 + $0x28] sm:$0xff]   ;;  %v680_v2 = vld [vmem:[%s958_s8 + $0x18] sm:$0xff]  }
   0x9   :  { %616 = vmatpush3.msra.mxu1 %v156_v6  ;;  %v866_v35 = vld [vmem:[%s956_s0] sm:$0xf]  ;;  %v681_v3 = vld [vmem:[%s958_s8 + $0x10] sm:$0xff]   ;;  %v682_v4 = vld [vmem:[%s958_s8 + $0x8] sm:$0xff]  }
   0xa   :  { %617 = vmatprep.subr.mxu1 %v694_v0  ;;  %v45_v39 = vunpack.c.l.bf16 %v866_v35  ;;  %v249_v56 = vld [vmem:[%s957_s7] sm:$0xff]  ;;  %v684_v6 = vld [vmem:[%s958_s8 + $0x48] ss:$0 sps:$4 sm:$0x33]  }
   0xb   :  { %618 = vmatpush3.msra.mxu1 %v155_v7  ;;  %645 = vmatpush3.msra.mxu0 %v249_v56  ;;  %v679_v1 = vld [vmem:[%s958_s8 + $0x20] sm:$0xff]   ;;  %v422_v7 = vsel %vm420_vm10, %v684_v6, 0 }
   0xc   :  { %619 = vmatprep.subr.mxu1 %v694_v0  ;;  %424 = vmatprep.subr.bf16.mxu0 %v698_v25  ;;  %v683_v5 = vld [vmem:[%s958_s8] sm:$0xff]  }
   0xd   :  { %620 = vmatpush3.msra.mxu1 %v154_v8  ;;  %v685_v8 = vld [vmem:[%s958_s8 + $0x40] sm:$0xff]  }
   0xe   :  { %621 = vmatprep.subr.mxu1 %v694_v0 }
   0xf   :  { %622 = vmatpush3.msra.mxu1 %v153_v9  ;;  %v47_v9 = vld [vmem:[%s959_s3] sm:$0xf] }
  0x10   :  { %623 = vmatprep.subr.mxu1 %v694_v0 }
  0x11   :  { %624 = vmatpush3.msra.mxu1 %v152_v10 }
  0x12   :  { %625 = vmatprep.subr.mxu1 %v694_v0 }
  0x13   :  { %626 = vmatpush3.msra.mxu1 %v151_v11 }
  0x14   :  { %627 = vmatprep.subr.mxu1 %v694_v0 }
  0x15   :  { %628 = vmatpush3.msra.mxu1 %v150_v12  ;;  %v686_v12 = vld [vmem:[%s960_s10 + $0x18] sm:$0xff]  }
  0x16   :  { %629 = vmatprep.subr.mxu1 %v694_v0 }
  0x17   :  { %630 = vmatpush3.msra.mxu1 %v149_v13  ;;  %v687_v13 = vld [vmem:[%s960_s10 + $0x10] sm:$0xff]  }
  0x18   :  { %631 = vmatprep.subr.mxu1 %v694_v0 }
  0x19   :  { %632 = vmatpush3.msra.mxu1 %v148_v14 }
  0x1a   :  { %633 = vmatprep.subr.mxu1 %v694_v0 }
  0x1b   :  { %634 = vmatpush3.msra.mxu1 %v147_v15 }
  0x1c   :  { %635 = vmatprep.subr.mxu1 %v694_v0 }
  0x1d   :  { %636 = vmatpush3.msra.mxu1 %v146_v17 }
  0x1e   :  { %637 = vmatprep.subr.mxu1 %v694_v0 }
  0x1f   :  { %638 = vmatpush3.msra.mxu1 %v145_v20  ;;  %v17_v20 = vstv %s961_s11 }
  0x20   :  { %639 = vmatprep.subr.mxu1 %v694_v0  ;;  %18 = vst [vmem:[#allocation2] sm:$0x1] %v17_v20 }
  0x21   :  { %640 = vmatpush3.msra.mxu1 %v144_v22 }
  0x22   :  { %649 = vmatprep.subr.bf16.mxu1 %v694_v0 }
  0xc6   :  { %v102_v18 = vpop.f32.mrf.mxu0 }
  0xc7   :  { %v103_v19 = vadd.f32 %v554_v16, %v102_v18  ;;  %v688_v18 = vld [vmem:[%s960_s10 + $0x8] sm:$0xff]  }
  0xc8   :  { %v607_v21 = vpop.f32.mrf.mxu0 }
  0xc9   :  { %115 = vrot.lane.b32.xlu1 %v103_v19, %s696_s17  ;;  %109 = vrot.lane.b32.xlu0 %v103_v19, %s697_s5  ;;  %v559_v21 = vld [vmem:[%s962_s9] ss:$0 sm:$0xff] }
  0xca   :  { %v105_v23 = vpop.f32.mrf.mxu0 }
  0xcc   :  { %v608_v24 = vpop.f32.mrf.mxu0 }
  0xcd   :  { %118 = vrot.lane.b32.xlu1 %v103_v19, %s699_s20  ;;  %112 = vrot.lane.b32.xlu0 %v103_v19, %s700_s21 }
  0xd1   :  { %124 = vrot.lane.b32.xlu1 %v103_v19, %s701_s22  ;;  %121 = vrot.lane.b32.xlu0 %v103_v19, %s702_s23 }
  0xd5   :  { %127 = vrot.lane.b32.xlu0 %v103_v19, %s703_s4  ;;  %233 = vperm.xlu1 %672, %v48_v26  }
 0x13b   :  { %v116_v27 = vpop.permute.xlu1 %115  ;;  %v110_v28 = vpop.permute.xlu0 %109 }
 0x13c   :  { %v130_v29 = vsel %vm64_vm1, %v103_v19, %v110_v28  ;;  %v689_v19 = vld [vmem:[%s960_s10] sm:$0xff]  }
 0x13d   :  { %v571_v28 = vld [vmem:[#allocation2] ss:$0 sm:$0xff] }
 0x13f   :  { %v119_v30 = vpop.permute.xlu1 %118  ;;  %v113_v31 = vpop.permute.xlu0 %112 }
 0x140   :  { %v132_v32 = vsel %vm131_vm2, %v130_v29, %v113_v31 }
 0x141   :  { %v134_v33 = vsel %vm133_vm3, %v132_v32, %v116_v27 }
 0x142   :  { %v136_v34 = vsel %vm135_vm4, %v134_v33, %v119_v30 }
 0x143   :  { %v122_v36 = vpop.permute.xlu0 %121  ;;  %v125_v37 = vpop.permute.xlu1 %124 }
 0x144   :  { %v138_v38 = vsel %vm137_vm5, %v136_v34, %v122_v36 }
 0x145   :  { %v140_v40 = vsel %vm139_vm6, %v138_v38, %v125_v37 }
 0x147   :  { %v128_v41 = vpop.permute.xlu0 %127 }
 0x148   :  { %v142_v42 = vsel %vm141_vm7, %v140_v40, %v128_v41 }
 0x149   :  { %v143_v43 = vmul.f32 %v142_v42, %v45_v39 }
 0x14b   :  { %642 = vmatmul.mubr.f32.vlgmr.msra.gmra.mxu1 %v143_v43 }
 0x14c   :  { %657 = vmatprep.mubr.msk.bf16.mxu1 %vm695_vm0, %v694_v0  ;;  %650 = vmatpush3.bf16.msra.mxu1 %v686_v12 }
 0x14d   :  { %651 = vmatprep.subr.bf16.mxu1 %v694_v0 }
 0x150   :  { %v234_v46 = vpop.permute.xlu1 %233  ;;  %652 = vmatpush3.bf16.msra.mxu1 %v687_v13 }
 0x151   :  { %vm235_vm8 = vcmp.lt.s32.totalorder %v231_v45, %v234_v46  ;;  %653 = vmatprep.subr.bf16.mxu1 %v694_v0 }
 0x154   :  { %654 = vmatpush3.bf16.msra.mxu1 %v688_v18 }
 0x155   :  { %655 = vmatprep.subr.bf16.mxu1 %v694_v0 }
 0x158   :  { %656 = vmatpush3.bf16.msra.mxu1 %v689_v19 }
 0x20b   :  { %v226_v47 = vpop.f32.mrf.mxu1 }
 0x20c   :  { %v236_v48 = vsel %vm235_vm8, %v226_v47, -1e+30 }
 0x20d   :  { %v643_v49 = vpop.f32.mrf.mxu1  ;;  %v238_v50 = vsel %vm237_vm9, %v236_v48, -inf }
 0x20e   :  { %239 = vmax.xlane.f32.xlu0 %v238_v50 }
 0x224   :  { %328 = vrot.lane.b32.xlu0 %v558_v57, %s704_s27 }
 0x297   :  { %v240_v51 = vpop.xlane.xlu0 %239 }
 0x298   :  { %v241_v52 = vsub.f32 %v236_v48, %v240_v51 }
 0x29a   :  { %v242_v53 = vmul.f32 1.442695, %v241_v52 }
 0x29b   :  { %v329_v10 = vpop.permute.xlu0 %328 }
 0x29c   :  { %690 = vpow2.f32 %v242_v53  ;;  %v333_v11 = vsel %vm330_vm11, %v47_v9, %v329_v10 }
 0x2a9   :  { %v691_v54 = vpop.eup %690 }
 0x2aa   :  { %v244_v55 = vsel %vm237_vm9, %v691_v54, 0.0 }
 0x2ab   :  { %245 = vadd.xlane.f32.xlu1 %v244_v55 }
 0x334   :  { %v246_v58 = vpop.xlane.xlu1 %245 }
 0x335   :  { %692 = vrcp.f32 %v246_v58 }
 0x342   :  { %v693_v59 = vpop.eup %692 }
 0x343   :  { %v248_v61 = vmul.f32 %v693_v59, %v691_v54 }
 0x345   :  { %647 = vmatmul.mubr.msk.f32.vlgmr.msra.gmra.mxu0 %vm237_vm9, %v248_v61 }
 0x346   :  { %425 = vmatpush1.bf16.msra.mxu0 %v676_v60  ;;  %570 = vmatprep.mubr.msk.bf16.mxu0 %vm417_vm12, %v333_v11 }
 0x347   :  { %426 = vmatprep.subr.bf16.mxu0 %v698_v25 }
 0x34a   :  { %427 = vmatpush1.bf16.msra.mxu0 %v677_v62 }
 0x34b   :  { %428 = vmatprep.subr.bf16.mxu0 %v698_v25 }
 0x34e   :  { %429 = vmatpush1.bf16.msra.mxu0 %v678_v63 }
 0x34f   :  { %430 = vmatprep.subr.bf16.mxu0 %v698_v25 }
 0x352   :  { %431 = vmatpush1.bf16.msra.mxu0 %v679_v1 }
 0x353   :  { %432 = vmatprep.subr.bf16.mxu0 %v698_v25 }
 0x356   :  { %433 = vmatpush1.bf16.msra.mxu0 %v680_v2 }
 0x357   :  { %434 = vmatprep.subr.bf16.mxu0 %v698_v25 }
 0x35a   :  { %435 = vmatpush1.bf16.msra.mxu0 %v681_v3 }
 0x35b   :  { %436 = vmatprep.subr.bf16.mxu0 %v698_v25 }
 0x35e   :  { %437 = vmatpush1.bf16.msra.mxu0 %v682_v4 }
 0x35f   :  { %438 = vmatprep.subr.bf16.mxu0 %v698_v25 }
 0x362   :  { %439 = vmatpush1.bf16.msra.mxu0 %v683_v5 }
 0x363   :  { %452 = vmatprep.subr.bf16.mxu0 %v698_v25 }
 0x366   :  { %453 = vmatpush2.bf16.msra.mxu0 %v422_v7 }
 0x367   :  { %454 = vmatprep.subr.bf16.mxu0 %v698_v25 }
 0x36a   :  { %455 = vmatpush2.bf16.msra.mxu0 %v685_v8 }
 0x405   :  { %v319_v14 = vpop.f32.mrf.mxu0 }
 0x406   :  { %v323_v15 = vmul.f32 %v319_v14, %v45_v39 }
 0x407   :  { %v648_v16 = vpop.f32.mrf.mxu0 }
 0x408   :  { %v324_v17 = vpack.c.bf16 %v323_v15, %v323_v15 }
 0x40a   :  { %457 = vmatmul.mubr.bf16.vlgmr.msra.gmra.mxu0 %v324_v17 }
 0x4ca   :  { %v458_v22 = vpop.f32.mrf.mxu0 }
 0x4cb   :  { %v459_v23 = vadd.f32 %v559_v21, %v458_v22 }
 0x4cc   :  { %v460_v24 = vpop.f32.mrf.mxu0 }
 0x4cd   :  { %v464_v25 = vmax.f32 %v459_v23, 0.0 }
 0x4ce   :  { %v461_v26 = vpop.f32.mrf.mxu0 }
 0x4cf   :  { %v465_v0 = vpack.c.bf16 %v464_v25, %v464_v25 }
 0x4d0   :  { %v462_v27 = vpop.f32.mrf.mxu0 }
 0x4d1   :  { %658 = vmatmul.mubr.msk.bf16.vlgmr.msra.gmra.mxu1 %vm135_vm4, %v465_v0 }
 0x591   :  { %v542_v29 = vpop.f32.mrf.mxu1 }
 0x592   :  { %v543_v30 = vadd.f32 %v571_v28, %v542_v29 }
 0x593   :  { %v659_v31 = vpop.f32.mrf.mxu1 }
 0x594   :  { %549 = vst.msk [vmem:[%s963_s12] sm:$0xff] %vm548_vm13, %v543_v30 }
 0x595   :  { %v545_v32 = vpop.f32.mrf.mxu1 }
 0x597   :  { %v660_v33 = vpop.f32.mrf.mxu1 }

</bundles_post_ra>
